<compile_context>
chip_gen: v7x
topology: tpu7x:2x2x1
jax: 0.10.0
libtpu: 0.0.40
codegen_flags: <defaults>
</compile_context>

<pallas_src>
import jax
import jax.numpy as jnp
from jax.experimental import pallas as pl
from jax.experimental.pallas import tpu as pltpu

LANE = 128            # lane width: final output is padded to this many cols
DEFAULT_TILE_B = 2048  # safe on v7x (64 MiB VMEM) and v5e/v6e


def _round_up(x, m):
    return ((x + m - 1) // m) * m


def _leaky_relu(x, slope=0.2):
    return jnp.where(x > 0, x, slope * x)


def disc_kernel(x_ref,
                w1_ref, b1_ref,
                w2_ref, b2_ref,
                w3_ref, b3_ref,
                w4_ref, b4_ref,
                w5_ref, b5_ref,
                wf_ref, bf_ref,
                o_ref):
    # MXU matmuls take bf16 inputs, accumulate in f32; bias/LeakyReLU in f32.
    h = x_ref[...].astype(jnp.bfloat16)
    for w_ref, b_ref in ((w1_ref, b1_ref), (w2_ref, b2_ref), (w3_ref, b3_ref),
                         (w4_ref, b4_ref), (w5_ref, b5_ref)):
        z = jnp.dot(h, w_ref[...], preferred_element_type=jnp.float32)
        z = _leaky_relu(z + b_ref[...])
        h = z.astype(jnp.bfloat16)
    out = jnp.dot(h, wf_ref[...], preferred_element_type=jnp.float32)
    o_ref[...] = (out + bf_ref[...]).astype(o_ref.dtype)


def deep_conv_disc_net(x, params, *, tile_b=DEFAULT_TILE_B):
    """x: (B, input_dim) float32.  params: dict from init_params()."""
    B, in_dim = x.shape
    out_dim = params["out_dim"]
    out_pad = params["wf"].shape[1]          # lane-dense (128) padded width

    # Clamp the batch tile to the (sublane-aligned) batch size and pad B.
    tile_b = max(8, min(tile_b, _round_up(B, 8)))
    B_pad = _round_up(B, tile_b)
    if B_pad != B:
        x = jnp.pad(x, ((0, B_pad - B), (0, 0)))
    grid = (B_pad // tile_b,)

    weights = (
        params["w1"], params["b1"],
        params["w2"], params["b2"],
        params["w3"], params["b3"],
        params["w4"], params["b4"],
        params["w5"], params["b5"],
        params["wf"], params["bf"],
    )

    # x is batch-tiled; all weights/biases use a constant index_map so they
    # are DMA'd once and stay VMEM-resident across grid steps.
    in_specs = [pl.BlockSpec((tile_b, in_dim), lambda i: (i, 0))]
    for w in weights:
        in_specs.append(pl.BlockSpec(w.shape, lambda i: (0, 0)))
    out_spec = pl.BlockSpec((tile_b, out_pad), lambda i: (i, 0))

    out = pl.pallas_call(
        disc_kernel,
        out_shape=jax.ShapeDtypeStruct((B_pad, out_pad), jnp.float32),
        grid=grid,
        in_specs=in_specs,
        out_specs=out_spec,
        compiler_params=pltpu.CompilerParams(
            dimension_semantics=("parallel",)),
    )(x, *weights)

    # Drop batch padding and the lane padding of the final layer.
    return out[:B, :out_dim]


def init_params(key, input_dim, output_dim):
    """Synthetic parameters matching the PyTorch module shapes.

    Conv1d(C_in, C_out, 1) weight (C_out, C_in, 1) is stored transposed as
    (C_in, C_out) so each layer is  h @ W + b.  Weights are bf16 (MXU
    inputs), biases are f32.  The final fc weight/bias are zero-padded to
    128 output columns for lane-dense stores.
    """
    dims = [(input_dim, 512), (512, 256), (256, 256), (256, 64), (64, 64)]
    names = ["1", "2", "3", "4", "5"]
    params = {"out_dim": output_dim}
    keys = jax.random.split(key, len(dims) + 1)
    for k, (cin, cout), n in zip(keys[:-1], dims, names):
        kw, kb = jax.random.split(k)
        scale = 1.0 / jnp.sqrt(cin)
        w = jax.random.uniform(kw, (cin, cout), jnp.float32, -1.0, 1.0) * scale
        b = jax.random.uniform(kb, (1, cout), jnp.float32, -1.0, 1.0) * scale
        params[f"w{n}"] = w.astype(jnp.bfloat16)
        params[f"b{n}"] = b
    kw, kb = jax.random.split(keys[-1])
    scale = 1.0 / jnp.sqrt(64)
    wf = jax.random.uniform(kw, (64, output_dim), jnp.float32, -1.0, 1.0) * scale
    bf = jax.random.uniform(kb, (1, output_dim), jnp.float32, -1.0, 1.0) * scale
    out_pad = _round_up(output_dim, LANE)
    params["wf"] = jnp.pad(wf, ((0, 0), (0, out_pad - output_dim))).astype(jnp.bfloat16)
    params["bf"] = jnp.pad(bf, ((0, 0), (0, out_pad - output_dim)))
    return params


def reference_forward(x, params):
    """Pure-JAX reference mirroring the kernel's dtype behaviour
    (bf16 MXU inputs, f32 accumulation / bias / LeakyReLU)."""
    h = x.astype(jnp.bfloat16)
    for n in ["1", "2", "3", "4", "5"]:
        z = jnp.dot(h, params[f"w{n}"], preferred_element_type=jnp.float32)
        z = z + params[f"b{n}"]
        z = jnp.where(z > 0, z, 0.2 * z)
        h = z.astype(jnp.bfloat16)
    out = jnp.dot(h, params["wf"], preferred_element_type=jnp.float32)
    out = out + params["bf"]
    return out[:, :params["out_dim"]]


if __name__ == "__main__":
    B, input_dim, output_dim = 8, 16, 4

    key = jax.random.PRNGKey(0)
    kx, kp = jax.random.split(key)
    x = jax.random.normal(kx, (B, input_dim), dtype=jnp.float32)
    params = init_params(kp, input_dim, output_dim)

    out = deep_conv_disc_net(x, params)
    out = jax.block_until_ready(out)

    ref = reference_forward(x, params)
    assert out.shape == (B, output_dim), out.shape
    assert jnp.allclose(out, ref, atol=1e-2, rtol=1e-2), "mismatch vs reference"

    print("KERNEL_OK")
</pallas_src>

<mosaic_0001>
module attributes {stable_mosaic.version = 11 : i64} {
  func.func @disc_kernel(%arg0: i32, %arg1: memref<8x16xf32, #tpu.memory_space<vmem>>, %arg2: memref<16x512xbf16, #tpu.memory_space<vmem>>, %arg3: memref<1x512xf32, #tpu.memory_space<vmem>>, %arg4: memref<512x256xbf16, #tpu.memory_space<vmem>>, %arg5: memref<1x256xf32, #tpu.memory_space<vmem>>, %arg6: memref<256x256xbf16, #tpu.memory_space<vmem>>, %arg7: memref<1x256xf32, #tpu.memory_space<vmem>>, %arg8: memref<256x64xbf16, #tpu.memory_space<vmem>>, %arg9: memref<1x64xf32, #tpu.memory_space<vmem>>, %arg10: memref<64x64xbf16, #tpu.memory_space<vmem>>, %arg11: memref<1x64xf32, #tpu.memory_space<vmem>>, %arg12: memref<64x128xbf16, #tpu.memory_space<vmem>>, %arg13: memref<1x128xf32, #tpu.memory_space<vmem>>, %arg14: memref<8x128xf32, #tpu.memory_space<vmem>>) attributes {dimension_semantics = [#tpu.dimension_semantics<parallel>], iteration_bounds = array<i64: 1>, scalar_prefetch = 0 : i64, scratch_operands = 0 : i64, tpu.core_type = #tpu.core_type<tc>, window_params = [{transform_indices = @transform_0, window_bounds = array<i64: 8, 16>}, {pipeline_mode = #tpu.pipeline_mode<synchronous>, transform_indices = @transform_1, window_bounds = array<i64: 16, 512>}, {pipeline_mode = #tpu.pipeline_mode<synchronous>, transform_indices = @transform_2, window_bounds = array<i64: 1, 512>}, {pipeline_mode = #tpu.pipeline_mode<synchronous>, transform_indices = @transform_3, window_bounds = array<i64: 512, 256>}, {pipeline_mode = #tpu.pipeline_mode<synchronous>, transform_indices = @transform_4, window_bounds = array<i64: 1, 256>}, {pipeline_mode = #tpu.pipeline_mode<synchronous>, transform_indices = @transform_5, window_bounds = array<i64: 256, 256>}, {pipeline_mode = #tpu.pipeline_mode<synchronous>, transform_indices = @transform_6, window_bounds = array<i64: 1, 256>}, {pipeline_mode = #tpu.pipeline_mode<synchronous>, transform_indices = @transform_7, window_bounds = array<i64: 256, 64>}, {pipeline_mode = #tpu.pipeline_mode<synchronous>, transform_indices = @transform_8, window_bounds = array<i64: 1, 64>}, {pipeline_mode = #tpu.pipeline_mode<synchronous>, transform_indices = @transform_9, window_bounds = array<i64: 64, 64>}, {pipeline_mode = #tpu.pipeline_mode<synchronous>, transform_indices = @transform_10, window_bounds = array<i64: 1, 64>}, {pipeline_mode = #tpu.pipeline_mode<synchronous>, transform_indices = @transform_11, window_bounds = array<i64: 64, 128>}, {pipeline_mode = #tpu.pipeline_mode<synchronous>, transform_indices = @transform_12, window_bounds = array<i64: 1, 128>}, {transform_indices = @transform_13, window_bounds = array<i64: 8, 128>}]} {
    %c0 = arith.constant 0 : index
    %c0_0 = arith.constant 0 : index
    %0 = vector.load %arg1[%c0, %c0_0] : memref<8x16xf32, #tpu.memory_space<vmem>>, vector<8x16xf32>
    %1 = arith.truncf %0 : vector<8x16xf32> to vector<8x16xbf16>
    %c0_1 = arith.constant 0 : index
    %c0_2 = arith.constant 0 : index
    %2 = vector.load %arg2[%c0_1, %c0_2] : memref<16x512xbf16, #tpu.memory_space<vmem>>, vector<16x512xbf16>
    %cst = arith.constant dense<0.000000e+00> : vector<8x512xf32>
    %3 = tpu.matmul %1, %2, %cst {dimension_numbers = #tpu.dot_dimension_numbers<[1], [0], [0], [1], [0, 0, 1, 1], [], []>} : vector<8x16xbf16>, vector<16x512xbf16>, vector<8x512xf32> -> vector<8x512xf32>
    %c0_3 = arith.constant 0 : index
    %c0_4 = arith.constant 0 : index
    %4 = vector.load %arg3[%c0_3, %c0_4] : memref<1x512xf32, #tpu.memory_space<vmem>>, vector<1x512xf32>
    %5 = vector.broadcast %4 : vector<1x512xf32> to vector<8x512xf32>
    %6 = arith.addf %3, %5 : vector<8x512xf32>
    %cst_5 = arith.constant 0.000000e+00 : f32
    %7 = vector.broadcast %cst_5 : f32 to vector<8x512xf32>
    %8 = arith.cmpf ogt, %6, %7 : vector<8x512xf32>
    %cst_6 = arith.constant 2.000000e-01 : f32
    %9 = vector.broadcast %cst_6 : f32 to vector<8x512xf32>
    %10 = arith.mulf %9, %6 : vector<8x512xf32>
    %11 = arith.select %8, %6, %10 : vector<8x512xi1>, vector<8x512xf32>
    %12 = arith.truncf %11 : vector<8x512xf32> to vector<8x512xbf16>
    %c0_7 = arith.constant 0 : index
    %c0_8 = arith.constant 0 : index
    %13 = vector.load %arg4[%c0_7, %c0_8] : memref<512x256xbf16, #tpu.memory_space<vmem>>, vector<512x256xbf16>
    %cst_9 = arith.constant dense<0.000000e+00> : vector<8x256xf32>
    %14 = tpu.matmul %12, %13, %cst_9 {dimension_numbers = #tpu.dot_dimension_numbers<[1], [0], [0], [1], [0, 0, 1, 1], [], []>} : vector<8x512xbf16>, vector<512x256xbf16>, vector<8x256xf32> -> vector<8x256xf32>
    %c0_10 = arith.constant 0 : index
    %c0_11 = arith.constant 0 : index
    %15 = vector.load %arg5[%c0_10, %c0_11] : memref<1x256xf32, #tpu.memory_space<vmem>>, vector<1x256xf32>
    %16 = vector.broadcast %15 : vector<1x256xf32> to vector<8x256xf32>
    %17 = arith.addf %14, %16 : vector<8x256xf32>
    %cst_12 = arith.constant 0.000000e+00 : f32
    %18 = vector.broadcast %cst_12 : f32 to vector<8x256xf32>
    %19 = arith.cmpf ogt, %17, %18 : vector<8x256xf32>
    %cst_13 = arith.constant 2.000000e-01 : f32
    %20 = vector.broadcast %cst_13 : f32 to vector<8x256xf32>
    %21 = arith.mulf %20, %17 : vector<8x256xf32>
    %22 = arith.select %19, %17, %21 : vector<8x256xi1>, vector<8x256xf32>
    %23 = arith.truncf %22 : vector<8x256xf32> to vector<8x256xbf16>
    %c0_14 = arith.constant 0 : index
    %c0_15 = arith.constant 0 : index
    %24 = vector.load %arg6[%c0_14, %c0_15] : memref<256x256xbf16, #tpu.memory_space<vmem>>, vector<256x256xbf16>
    %cst_16 = arith.constant dense<0.000000e+00> : vector<8x256xf32>
    %25 = tpu.matmul %23, %24, %cst_16 {dimension_numbers = #tpu.dot_dimension_numbers<[1], [0], [0], [1], [0, 0, 1, 1], [], []>} : vector<8x256xbf16>, vector<256x256xbf16>, vector<8x256xf32> -> vector<8x256xf32>
    %c0_17 = arith.constant 0 : index
    %c0_18 = arith.constant 0 : index
    %26 = vector.load %arg7[%c0_17, %c0_18] : memref<1x256xf32, #tpu.memory_space<vmem>>, vector<1x256xf32>
    %27 = vector.broadcast %26 : vector<1x256xf32> to vector<8x256xf32>
    %28 = arith.addf %25, %27 : vector<8x256xf32>
    %cst_19 = arith.constant 0.000000e+00 : f32
    %29 = vector.broadcast %cst_19 : f32 to vector<8x256xf32>
    %30 = arith.cmpf ogt, %28, %29 : vector<8x256xf32>
    %cst_20 = arith.constant 2.000000e-01 : f32
    %31 = vector.broadcast %cst_20 : f32 to vector<8x256xf32>
    %32 = arith.mulf %31, %28 : vector<8x256xf32>
    %33 = arith.select %30, %28, %32 : vector<8x256xi1>, vector<8x256xf32>
    %34 = arith.truncf %33 : vector<8x256xf32> to vector<8x256xbf16>
    %c0_21 = arith.constant 0 : index
    %c0_22 = arith.constant 0 : index
    %35 = vector.load %arg8[%c0_21, %c0_22] : memref<256x64xbf16, #tpu.memory_space<vmem>>, vector<256x64xbf16>
    %cst_23 = arith.constant dense<0.000000e+00> : vector<8x64xf32>
    %36 = tpu.matmul %34, %35, %cst_23 {dimension_numbers = #tpu.dot_dimension_numbers<[1], [0], [0], [1], [0, 0, 1, 1], [], []>} : vector<8x256xbf16>, vector<256x64xbf16>, vector<8x64xf32> -> vector<8x64xf32>
    %c0_24 = arith.constant 0 : index
    %c0_25 = arith.constant 0 : index
    %37 = vector.load %arg9[%c0_24, %c0_25] : memref<1x64xf32, #tpu.memory_space<vmem>>, vector<1x64xf32>
    %38 = vector.broadcast %37 : vector<1x64xf32> to vector<8x64xf32>
    %39 = arith.addf %36, %38 : vector<8x64xf32>
    %cst_26 = arith.constant 0.000000e+00 : f32
    %40 = vector.broadcast %cst_26 : f32 to vector<8x64xf32>
    %41 = arith.cmpf ogt, %39, %40 : vector<8x64xf32>
    %cst_27 = arith.constant 2.000000e-01 : f32
    %42 = vector.broadcast %cst_27 : f32 to vector<8x64xf32>
    %43 = arith.mulf %42, %39 : vector<8x64xf32>
    %44 = arith.select %41, %39, %43 : vector<8x64xi1>, vector<8x64xf32>
    %45 = arith.truncf %44 : vector<8x64xf32> to vector<8x64xbf16>
    %c0_28 = arith.constant 0 : index
    %c0_29 = arith.constant 0 : index
    %46 = vector.load %arg10[%c0_28, %c0_29] : memref<64x64xbf16, #tpu.memory_space<vmem>>, vector<64x64xbf16>
    %cst_30 = arith.constant dense<0.000000e+00> : vector<8x64xf32>
    %47 = tpu.matmul %45, %46, %cst_30 {dimension_numbers = #tpu.dot_dimension_numbers<[1], [0], [0], [1], [0, 0, 1, 1], [], []>} : vector<8x64xbf16>, vector<64x64xbf16>, vector<8x64xf32> -> vector<8x64xf32>
    %c0_31 = arith.constant 0 : index
    %c0_32 = arith.constant 0 : index
    %48 = vector.load %arg11[%c0_31, %c0_32] : memref<1x64xf32, #tpu.memory_space<vmem>>, vector<1x64xf32>
    %49 = vector.broadcast %48 : vector<1x64xf32> to vector<8x64xf32>
    %50 = arith.addf %47, %49 : vector<8x64xf32>
    %cst_33 = arith.constant 0.000000e+00 : f32
    %51 = vector.broadcast %cst_33 : f32 to vector<8x64xf32>
    %52 = arith.cmpf ogt, %50, %51 : vector<8x64xf32>
    %cst_34 = arith.constant 2.000000e-01 : f32
    %53 = vector.broadcast %cst_34 : f32 to vector<8x64xf32>
    %54 = arith.mulf %53, %50 : vector<8x64xf32>
    %55 = arith.select %52, %50, %54 : vector<8x64xi1>, vector<8x64xf32>
    %56 = arith.truncf %55 : vector<8x64xf32> to vector<8x64xbf16>
    %c0_35 = arith.constant 0 : index
    %c0_36 = arith.constant 0 : index
    %57 = vector.load %arg12[%c0_35, %c0_36] : memref<64x128xbf16, #tpu.memory_space<vmem>>, vector<64x128xbf16>
    %cst_37 = arith.constant dense<0.000000e+00> : vector<8x128xf32>
    %58 = tpu.matmul %56, %57, %cst_37 {dimension_numbers = #tpu.dot_dimension_numbers<[1], [0], [0], [1], [0, 0, 1, 1], [], []>} : vector<8x64xbf16>, vector<64x128xbf16>, vector<8x128xf32> -> vector<8x128xf32>
    %c0_38 = arith.constant 0 : index
    %c0_39 = arith.constant 0 : index
    %59 = vector.load %arg13[%c0_38, %c0_39] : memref<1x128xf32, #tpu.memory_space<vmem>>, vector<1x128xf32>
    %60 = vector.broadcast %59 : vector<1x128xf32> to vector<8x128xf32>
    %61 = arith.addf %58, %60 : vector<8x128xf32>
    %c0_40 = arith.constant 0 : index
    %c0_41 = arith.constant 0 : index
    %62 = vector.load %arg14[%c0_40, %c0_41] : memref<8x128xf32, #tpu.memory_space<vmem>>, vector<8x128xf32>
    tpu.vector_store %arg14[%c0_40, %c0_41], %61 {strides = array<i32>} : memref<8x128xf32, #tpu.memory_space<vmem>>, vector<8x128xf32>,
    return
  }
  func.func @transform_0(%arg0: i32) -> (i32, i32) {
    %c0_i32 = arith.constant 0 : i32
    %c0_i32_0 = arith.constant 0 : i32
    return %arg0, %c0_i32 : i32, i32
  }
  func.func @transform_1(%arg0: i32) -> (i32, i32) {
    %c0_i32 = arith.constant 0 : i32
    %c0_i32_0 = arith.constant 0 : i32
    %c0_i32_1 = arith.constant 0 : i32
    return %c0_i32, %c0_i32_0 : i32, i32
  }
  func.func @transform_2(%arg0: i32) -> (i32, i32) {
    %c0_i32 = arith.constant 0 : i32
    %c0_i32_0 = arith.constant 0 : i32
    %c0_i32_1 = arith.constant 0 : i32
    return %c0_i32, %c0_i32_0 : i32, i32
  }
  func.func @transform_3(%arg0: i32) -> (i32, i32) {
    %c0_i32 = arith.constant 0 : i32
    %c0_i32_0 = arith.constant 0 : i32
    %c0_i32_1 = arith.constant 0 : i32
    return %c0_i32, %c0_i32_0 : i32, i32
  }
  func.func @transform_4(%arg0: i32) -> (i32, i32) {
    %c0_i32 = arith.constant 0 : i32
    %c0_i32_0 = arith.constant 0 : i32
    %c0_i32_1 = arith.constant 0 : i32
    return %c0_i32, %c0_i32_0 : i32, i32
  }
  func.func @transform_5(%arg0: i32) -> (i32, i32) {
    %c0_i32 = arith.constant 0 : i32
    %c0_i32_0 = arith.constant 0 : i32
    %c0_i32_1 = arith.constant 0 : i32
    return %c0_i32, %c0_i32_0 : i32, i32
  }
  func.func @transform_6(%arg0: i32) -> (i32, i32) {
    %c0_i32 = arith.constant 0 : i32
    %c0_i32_0 = arith.constant 0 : i32
    %c0_i32_1 = arith.constant 0 : i32
    return %c0_i32, %c0_i32_0 : i32, i32
  }
  func.func @transform_7(%arg0: i32) -> (i32, i32) {
    %c0_i32 = arith.constant 0 : i32
    %c0_i32_0 = arith.constant 0 : i32
    %c0_i32_1 = arith.constant 0 : i32
    return %c0_i32, %c0_i32_0 : i32, i32
  }
  func.func @transform_8(%arg0: i32) -> (i32, i32) {
    %c0_i32 = arith.constant 0 : i32
    %c0_i32_0 = arith.constant 0 : i32
    %c0_i32_1 = arith.constant 0 : i32
    return %c0_i32, %c0_i32_0 : i32, i32
  }
  func.func @transform_9(%arg0: i32) -> (i32, i32) {
    %c0_i32 = arith.constant 0 : i32
    %c0_i32_0 = arith.constant 0 : i32
    %c0_i32_1 = arith.constant 0 : i32
    return %c0_i32, %c0_i32_0 : i32, i32
  }
  func.func @transform_10(%arg0: i32) -> (i32, i32) {
    %c0_i32 = arith.constant 0 : i32
    %c0_i32_0 = arith.constant 0 : i32
    %c0_i32_1 = arith.constant 0 : i32
    return %c0_i32, %c0_i32_0 : i32, i32
  }
  func.func @transform_11(%arg0: i32) -> (i32, i32) {
    %c0_i32 = arith.constant 0 : i32
    %c0_i32_0 = arith.constant 0 : i32
    %c0_i32_1 = arith.constant 0 : i32
    return %c0_i32, %c0_i32_0 : i32, i32
  }
  func.func @transform_12(%arg0: i32) -> (i32, i32) {
    %c0_i32 = arith.constant 0 : i32
    %c0_i32_0 = arith.constant 0 : i32
    %c0_i32_1 = arith.constant 0 : i32
    return %c0_i32, %c0_i32_0 : i32, i32
  }
  func.func @transform_13(%arg0: i32) -> (i32, i32) {
    %c0_i32 = arith.constant 0 : i32
    %c0_i32_0 = arith.constant 0 : i32
    return %arg0, %c0_i32 : i32, i32
  }
}

</mosaic_0001>

<bundles_post_ra>
// kernel: tpu_custom_call.1
= control target key start
LH: loop header
LB: loop body
LE: loop exit
PB: predicated region body
PF: predicated region fallthrough
CT: control target
= control target key end

     0   :  { %18 = vsyncpa [#allocation3], 0  ;;  %s2023_s0 = inlined_call_operand.vmem [shape: f32[8,16], index: 0, kind: input, shape index: {}]   ;;  %s2024_s1 = inlined_call_operand.vmem [shape: bf16[16,512], index: 1, kind: input, shape index: {}]   ;;  %s2025_s2 = inlined_call_operand.vmem [shape: f32[1,512], index: 2, kind: input, shape index: {}]   ;;  %s2026_s3 = inlined_call_operand.hbm [shape: bf16[512,256], index: 3, kind: input, shape index: {}]   ;;  %s2027_s4 = inlined_call_operand.vmem [shape: f32[1,256], index: 4, kind: input, shape index: {}]   ;;  %s2028_s5 = inlined_call_operand.hbm [shape: bf16[256,256], index: 5, kind: input, shape index: {}]   ;;  %s2029_s6 = inlined_call_operand.vmem [shape: f32[1,256], index: 6, kind: input, shape index: {}]   ;;  %s2030_s7 = inlined_call_operand.vmem [shape: bf16[256,64], index: 7, kind: input, shape index: {}]   ;;  %s2031_s8 = inlined_call_operand.vmem [shape: f32[1,64], index: 8, kind: input, shape index: {}]   ;;  %s2032_s9 = inlined_call_operand.vmem [shape: bf16[64,64], index: 9, kind: input, shape index: {}]   ;;  %s2033_s10 = inlined_call_operand.vmem [shape: f32[1,64], index: 10, kind: input, shape index: {}]   ;;  %s2034_s11 = inlined_call_operand.vmem [shape: bf16[64,128], index: 11, kind: input, shape index: {}]   ;;  %s2035_s12 = inlined_call_operand.vmem [shape: f32[1,128], index: 12, kind: input, shape index: {}]   ;;  %s2036_s13 = inlined_call_operand.hbm [shape: f32[8,128], index: 13, kind: output, shape index: {}]  }
   0x1   :  { %19 = vsyncpa [#allocation6], 0 }
   0x2   :  { %20 = vsyncpa [#allocation4], 0  ;;  %s1775_s25 = smov [#allocation2]   ;;  %s1703_s29 = scalar_lea.hbm %s2026_s3, 8192 }
   0x3   :  { %s32_s26 = sshll.u32 %s1775_s25, 4  ;;  %p1704_p0 = scmp.ne.s32.totalorder %s2026_s3, %s1703_s29  ;;  %s33_s26 = int_to_ptr.vmem [resolvable:$true] %s32_s26 }
   0x4   :  { %p1707_p1 = scmp.lt.u32.totalorder %s1703_s29, %s2026_s3 }
   0x6   :  { %p1709_p2 = pnand %p1707_p1, %p1704_p0 }
   0x8   :  { %1712 = shalt.err (!%p1709_p2)
}
   0x9   :  { %s1713_s17 = scalar_lea.vmem %s33_s26, 8192  ;;  %p1718_p4 = scmp.lt.s32.totalorder %s33_s26, %s33_s26 }
   0xa   :  { %p1714_p3 = scmp.ne.s32.totalorder %s33_s26, %s1713_s17  ;;  %p1719_p5 = scmp.lt.s32.totalorder %s1713_s17, %s1713_s17 }
   0xc   :  { %p1720_p6 = por %p1719_p5, %p1718_p4 }
   0xe   :  { %p1721_p7 = pnand %p1720_p6, %p1714_p3 }
  0x10   :  { %1724 = shalt.err (!%p1721_p7)
}
  0x11   :  { %s1776_s18 = smov 128   ;;  %s1777_s19 = smov 8  }
  0x12   :  { %38 = dma.hbm_to_vmem [thread:$0]  %s2026_s3, 8192, %s33_s26, [#allocation3], %s1776_s18, %s1776_s18, %s1777_s19  }
  0x13   :  { %s1778_s22 = smov [#allocation5]   ;;  %s1725_s27 = scalar_lea.hbm %s2028_s5, 4096 }
  0x14   :  { %s46_s23 = sshll.u32 %s1778_s22, 4  ;;  %p1726_p8 = scmp.ne.s32.totalorder %s2028_s5, %s1725_s27  ;;  %s47_s23 = int_to_ptr.vmem [resolvable:$true] %s46_s23 }
  0x15   :  { %p1729_p9 = scmp.lt.u32.totalorder %s1725_s27, %s2028_s5 }
  0x17   :  { %p1731_p10 = pnand %p1729_p9, %p1726_p8 }
  0x19   :  { %1734 = shalt.err (!%p1731_p10)
}
  0x1a   :  { %s1735_s15 = scalar_lea.vmem %s47_s23, 4096  ;;  %p1740_p12 = scmp.lt.s32.totalorder %s47_s23, %s47_s23 }
  0x1b   :  { %p1736_p11 = scmp.ne.s32.totalorder %s47_s23, %s1735_s15  ;;  %p1741_p13 = scmp.lt.s32.totalorder %s1735_s15, %s1735_s15 }
  0x1d   :  { %p1742_p0 = por %p1741_p13, %p1740_p12 }
  0x1f   :  { %p1743_p1 = pnand %p1742_p0, %p1736_p11 }
  0x21   :  { %1746 = shalt.err (!%p1743_p1)
}
  0x22   :  { %52 = dma.hbm_to_vmem [thread:$0]  %s2028_s5, 4096, %s47_s23, [#allocation6], %s1776_s18, %s1776_s18, %s1777_s19  }
  0x23   :  { %1769 = dma.done.wait [#allocation3], 8192  }
  0x24   :  { %1770 = vsyncadd [#allocation3], 4294959104 }
  0x25   :  { %1771 = dma.done.wait [#allocation6], 4096  }
  0x26   :  { %1772 = vsyncadd [#allocation6], 4294963200  ;;  %v1779_v0 = vmov 0   ;;  %v1529_v1 = vld [vmem:[%s2024_s1 + $0x4] ss:$16 sps:$4 sm:$0xff]   ;;  %vm122_vm0 = vcmask 130048   ;;  %v82_v61 = vlaneseq }
  0x27   :  { %158 = vmatprep.mubr.bf16.mxu0 %v1779_v0  ;;  %199 = vmatprep.mubr.bf16.mxu1 %v1779_v0  ;;  %v1531_v2 = vld [vmem:[%s2024_s1] ss:$16 sps:$4 sm:$0xff]   ;;  %v1532_v5 = vld [vmem:[%s2024_s1 + $0xc] ss:$16 sps:$4 sm:$0xff]   ;;  %v1534_v6 = vld [vmem:[%s2024_s1 + $0x8] ss:$16 sps:$4 sm:$0xff]  }
  0x28   :  { %v74_v3 = vld [vmem:[%s2023_s0] sm:$0xff]  ;;  %126 = vmatprep.subr.bf16.mxu0 %v1529_v1  ;;  %167 = vmatprep.subr.bf16.mxu1 %v1532_v5  ;;  %v1540_v9 = vld [vmem:[#allocation2 + $0x14] ss:$8 sps:$4 sm:$0xff]   ;;  %v1538_v10 = vld [vmem:[#allocation2 + $0x10] ss:$8 sps:$4 sm:$0xff]   ;;  %v1892_v0 = vshrl.u32 %v82_v61, 7 }
  0x29   :  { %v75_v4 = vpack.c.bf16 %v74_v3, %v74_v3  ;;  %127 = vmatpush1.bf16.msra.mxu0 %v1531_v2  ;;  %v1535_v7 = vld [vmem:[#allocation2] ss:$8 sps:$4 sm:$0xff]   ;;  %v1537_v8 = vld [vmem:[#allocation2 + $0x4] ss:$8 sps:$4 sm:$0xff]   ;;  %168 = vmatpush1.bf16.msra.mxu1 %v1534_v6  ;;  %v1546_v13 = vld [vmem:[#allocation2 + $0x34] ss:$8 sps:$4 sm:$0xff]  }
  0x2a   :  { %620 = vmatprep.subr.bf16.mxu0 %v1537_v8  ;;  %v1543_v11 = vld [vmem:[#allocation2 + $0x24] ss:$8 sps:$4 sm:$0xff]   ;;  %v1541_v12 = vld [vmem:[#allocation2 + $0x20] ss:$8 sps:$4 sm:$0xff]   ;;  %v1544_v14 = vld [vmem:[#allocation2 + $0x30] ss:$8 sps:$4 sm:$0xff]  }
  0x2b   :  { %v1549_v15 = vld [vmem:[#allocation2 + $0x44] ss:$8 sps:$4 sm:$0xff]   ;;  %v1547_v16 = vld [vmem:[#allocation2 + $0x40] ss:$8 sps:$4 sm:$0xff]   ;;  %v1552_v17 = vld [vmem:[#allocation2 + $0x54] ss:$8 sps:$4 sm:$0xff]  }
  0x2c   :  { %1332 = vmatmul.mubr.msk.bf16.vlgmr.msra.gmra.mrb[0].mxu0 %vm122_vm0, %v75_v4  ;;  %1333 = vmatmul.mubr.msk.bf16.vlgmr.msra.gmra.mrb[0].mxu1 %vm122_vm0, %v75_v4  ;;  %v1550_v18 = vld [vmem:[#allocation2 + $0x50] ss:$8 sps:$4 sm:$0xff]   ;;  %v1555_v19 = vld [vmem:[#allocation2 + $0x64] ss:$8 sps:$4 sm:$0xff]   ;;  %v1553_v20 = vld [vmem:[#allocation2 + $0x60] ss:$8 sps:$4 sm:$0xff]  }
  0x2d   :  { %621 = vmatpush1.bf16.msra.mxu0 %v1535_v7  ;;  %v1558_v21 = vld [vmem:[#allocation2 + $0x74] ss:$8 sps:$4 sm:$0xff]   ;;  %v1556_v22 = vld [vmem:[#allocation2 + $0x70] ss:$8 sps:$4 sm:$0xff]   ;;  %v1561_v23 = vld [vmem:[#allocation2 + $0x84] ss:$8 sps:$4 sm:$0xff]  }
  0x2e   :  { %622 = vmatprep.subr.bf16.mxu0 %v1540_v9  ;;  %v1559_v24 = vld [vmem:[#allocation2 + $0x80] ss:$8 sps:$4 sm:$0xff]   ;;  %v1564_v25 = vld [vmem:[#allocation2 + $0x94] ss:$8 sps:$4 sm:$0xff]   ;;  %v1562_v26 = vld [vmem:[#allocation2 + $0x90] ss:$8 sps:$4 sm:$0xff]  }
  0x2f   :  { %v1567_v27 = vld [vmem:[#allocation2 + $0xa4] ss:$8 sps:$4 sm:$0xff]   ;;  %v1565_v28 = vld [vmem:[#allocation2 + $0xa0] ss:$8 sps:$4 sm:$0xff]   ;;  %v1570_v29 = vld [vmem:[#allocation2 + $0xb4] ss:$8 sps:$4 sm:$0xff]  }
  0x30   :  { %v1568_v30 = vld [vmem:[#allocation2 + $0xb0] ss:$8 sps:$4 sm:$0xff]   ;;  %v1573_v31 = vld [vmem:[#allocation2 + $0xc4] ss:$8 sps:$4 sm:$0xff]   ;;  %v1571_v32 = vld [vmem:[#allocation2 + $0xc0] ss:$8 sps:$4 sm:$0xff]  }
  0x31   :  { %623 = vmatpush1.bf16.msra.mxu0 %v1538_v10  ;;  %v1576_v33 = vld [vmem:[#allocation2 + $0xd4] ss:$8 sps:$4 sm:$0xff]   ;;  %v1574_v34 = vld [vmem:[#allocation2 + $0xd0] ss:$8 sps:$4 sm:$0xff]   ;;  %v1579_v35 = vld [vmem:[#allocation2 + $0xe4] ss:$8 sps:$4 sm:$0xff]  }
  0x32   :  { %624 = vmatprep.subr.bf16.mxu0 %v1543_v11  ;;  %v1577_v36 = vld [vmem:[#allocation2 + $0xe0] ss:$8 sps:$4 sm:$0xff]   ;;  %v1582_v37 = vld [vmem:[#allocation2 + $0xf4] ss:$8 sps:$4 sm:$0xff]   ;;  %v1580_v38 = vld [vmem:[#allocation2 + $0xf0] ss:$8 sps:$4 sm:$0xff]  }
  0x33   :  { %v1585_v39 = vld [vmem:[#allocation2 + $0x104] ss:$8 sps:$4 sm:$0xff]   ;;  %v1631_v40 = vld [vmem:[#allocation5] ss:$8 sps:$4 sm:$0xff]   ;;  %v1636_v42 = vld [vmem:[#allocation5 + $0x14] ss:$8 sps:$4 sm:$0xff]  }
  0x34   :  { %v1633_v41 = vld [vmem:[#allocation5 + $0x4] ss:$8 sps:$4 sm:$0xff]   ;;  %v1634_v43 = vld [vmem:[#allocation5 + $0x10] ss:$8 sps:$4 sm:$0xff]   ;;  %v1637_v45 = vld [vmem:[#allocation5 + $0x20] ss:$8 sps:$4 sm:$0xff]  }
  0x35   :  { %625 = vmatpush1.bf16.msra.mxu0 %v1541_v12  ;;  %914 = vmatprep.subr.bf16.mxu1 %v1633_v41  ;;  %v1639_v44 = vld [vmem:[#allocation5 + $0x24] ss:$8 sps:$4 sm:$0xff]   ;;  %v1642_v46 = vld [vmem:[#allocation5 + $0x34] ss:$8 sps:$4 sm:$0xff]   ;;  %v1640_v47 = vld [vmem:[#allocation5 + $0x30] ss:$8 sps:$4 sm:$0xff]  }
  0x36   :  { %626 = vmatprep.subr.bf16.mxu0 %v1546_v13  ;;  %915 = vmatpush1.bf16.msra.mxu1 %v1631_v40  ;;  %v1645_v48 = vld [vmem:[#allocation5 + $0x44] ss:$8 sps:$4 sm:$0xff]   ;;  %v1643_v49 = vld [vmem:[#allocation5 + $0x40] ss:$8 sps:$4 sm:$0xff]   ;;  %v1648_v50 = vld [vmem:[#allocation5 + $0x54] ss:$8 sps:$4 sm:$0xff]  }
  0x37   :  { %916 = vmatprep.subr.bf16.mxu1 %v1636_v42  ;;  %v1646_v51 = vld [vmem:[#allocation5 + $0x50] ss:$8 sps:$4 sm:$0xff]   ;;  %v1651_v52 = vld [vmem:[#allocation5 + $0x64] ss:$8 sps:$4 sm:$0xff]   ;;  %v1649_v53 = vld [vmem:[#allocation5 + $0x60] ss:$8 sps:$4 sm:$0xff]  }
  0x38   :  { %v1654_v54 = vld [vmem:[#allocation5 + $0x74] ss:$8 sps:$4 sm:$0xff]   ;;  %v1652_v55 = vld [vmem:[#allocation5 + $0x70] ss:$8 sps:$4 sm:$0xff]   ;;  %v1657_v56 = vld [vmem:[#allocation5 + $0x84] ss:$8 sps:$4 sm:$0xff]  }
  0x39   :  { %627 = vmatpush1.bf16.msra.mxu0 %v1544_v14  ;;  %v1655_v57 = vld [vmem:[#allocation5 + $0x80] ss:$8 sps:$4 sm:$0xff]   ;;  %v1660_v58 = vld [vmem:[#allocation5 + $0x94] ss:$8 sps:$4 sm:$0xff]   ;;  %v1658_v59 = vld [vmem:[#allocation5 + $0x90] ss:$8 sps:$4 sm:$0xff]  }
  0x3a   :  { %628 = vmatprep.subr.bf16.mxu0 %v1549_v15  ;;  %917 = vmatpush1.bf16.msra.mxu1 %v1634_v43  ;;  %v1663_v60 = vld [vmem:[#allocation5 + $0xa4] ss:$8 sps:$4 sm:$0xff]   ;;  %v1661_v62 = vld [vmem:[#allocation5 + $0xa0] ss:$8 sps:$4 sm:$0xff]   ;;  %v1666_v63 = vld [vmem:[#allocation5 + $0xb4] ss:$8 sps:$4 sm:$0xff]  }
  0x3b   :  { %918 = vmatprep.subr.bf16.mxu1 %v1639_v44  ;;  %v1664_v1 = vld [vmem:[#allocation5 + $0xb0] ss:$8 sps:$4 sm:$0xff]   ;;  %v1669_v2 = vld [vmem:[#allocation5 + $0xc4] ss:$8 sps:$4 sm:$0xff]   ;;  %v1895_v3 = vsub.s32 0, %v1892_v0  ;;  %v1903_v6 = vsub.s32 1, %v1892_v0 }
  0x3c   :  { %v1667_v4 = vld [vmem:[#allocation5 + $0xc0] ss:$8 sps:$4 sm:$0xff]   ;;  %v1672_v7 = vld [vmem:[#allocation5 + $0xd4] ss:$8 sps:$4 sm:$0xff]   ;;  %v96_v8 = vsub.s32 3, %v1892_v0  ;;  %vm1781_vm9 = vmmov 0  }
  0x3d   :  { %629 = vmatpush1.bf16.msra.mxu0 %v1547_v16  ;;  %v1900_v5 = vld [vmem:[%s2025_s2] sm:$0xf]  ;;  %v1670_v10 = vld [vmem:[#allocation5 + $0xd0] ss:$8 sps:$4 sm:$0xff]   ;;  %v1597_v40 = vld [vmem:[#allocation2 + $0x144] ss:$8 sps:$4 sm:$0xff]  }
  0x3e   :  { %630 = vmatprep.subr.bf16.mxu0 %v1552_v17  ;;  %919 = vmatpush1.bf16.msra.mxu1 %v1637_v45  ;;  %v85_v9 = vrot.slane %v1900_v5, %v1895_v3  ;;  %v89_v11 = vrot.slane %v1900_v5, %v1903_v6  ;;  %v97_v13 = vrot.slane %v1900_v5, %v96_v8  ;;  %v1595_v41 = vld [vmem:[#allocation2 + $0x140] ss:$8 sps:$4 sm:$0xff]   ;;  %v1600_v42 = vld [vmem:[#allocation2 + $0x154] ss:$8 sps:$4 sm:$0xff]   ;;  %v1598_v43 = vld [vmem:[#allocation2 + $0x150] ss:$8 sps:$4 sm:$0xff]  }
  0x3f   :  { %920 = vmatprep.subr.bf16.mxu1 %v1642_v46  ;;  %v1603_v44 = vld [vmem:[#allocation2 + $0x164] ss:$8 sps:$4 sm:$0xff]   ;;  %v1601_v45 = vld [vmem:[#allocation2 + $0x160] ss:$8 sps:$4 sm:$0xff]   ;;  %v1606_v46 = vld [vmem:[#allocation2 + $0x174] ss:$8 sps:$4 sm:$0xff]  }
  0x40   :  { %v1622_v61 = vld [vmem:[#allocation2 + $0x1d0] ss:$8 sps:$4 sm:$0xff]   ;;  %vm1181_vm11 = vcmask 523264  }
  0x41   :  { %631 = vmatpush1.bf16.msra.mxu0 %v1550_v18 }
  0x42   :  { %632 = vmatprep.subr.bf16.mxu0 %v1555_v19  ;;  %921 = vmatpush1.bf16.msra.mxu1 %v1640_v47  ;;  %v1604_v47 = vld [vmem:[#allocation2 + $0x170] ss:$8 sps:$4 sm:$0xff]  }
  0x43   :  { %922 = vmatprep.subr.bf16.mxu1 %v1645_v48  ;;  %v1609_v48 = vld [vmem:[#allocation2 + $0x184] ss:$8 sps:$4 sm:$0xff]  }
  0x45   :  { %633 = vmatpush1.bf16.msra.mxu0 %v1553_v20 }
  0x46   :  { %634 = vmatprep.subr.bf16.mxu0 %v1558_v21  ;;  %923 = vmatpush1.bf16.msra.mxu1 %v1643_v49  ;;  %v1607_v49 = vld [vmem:[#allocation2 + $0x180] ss:$8 sps:$4 sm:$0xff]  }
  0x47   :  { %924 = vmatprep.subr.bf16.mxu1 %v1648_v50  ;;  %v1612_v50 = vld [vmem:[#allocation2 + $0x194] ss:$8 sps:$4 sm:$0xff]  }
  0x49   :  { %635 = vmatpush1.bf16.msra.mxu0 %v1556_v22 }
  0x4a   :  { %636 = vmatprep.subr.bf16.mxu0 %v1561_v23  ;;  %925 = vmatpush1.bf16.msra.mxu1 %v1646_v51  ;;  %v1610_v51 = vld [vmem:[#allocation2 + $0x190] ss:$8 sps:$4 sm:$0xff]  }
  0x4b   :  { %926 = vmatprep.subr.bf16.mxu1 %v1651_v52  ;;  %v1615_v52 = vld [vmem:[#allocation2 + $0x1a4] ss:$8 sps:$4 sm:$0xff]  }
  0x4d   :  { %637 = vmatpush1.bf16.msra.mxu0 %v1559_v24 }
  0x4e   :  { %638 = vmatprep.subr.bf16.mxu0 %v1564_v25  ;;  %927 = vmatpush1.bf16.msra.mxu1 %v1649_v53  ;;  %v1613_v53 = vld [vmem:[#allocation2 + $0x1a0] ss:$8 sps:$4 sm:$0xff]  }
  0x4f   :  { %928 = vmatprep.subr.bf16.mxu1 %v1654_v54  ;;  %v1618_v54 = vld [vmem:[#allocation2 + $0x1b4] ss:$8 sps:$4 sm:$0xff]  }
  0x51   :  { %639 = vmatpush1.bf16.msra.mxu0 %v1562_v26 }
  0x52   :  { %640 = vmatprep.subr.bf16.mxu0 %v1567_v27  ;;  %929 = vmatpush1.bf16.msra.mxu1 %v1652_v55  ;;  %v1616_v55 = vld [vmem:[#allocation2 + $0x1b0] ss:$8 sps:$4 sm:$0xff]  }
  0x53   :  { %930 = vmatprep.subr.bf16.mxu1 %v1657_v56  ;;  %v1621_v56 = vld [vmem:[#allocation2 + $0x1c4] ss:$8 sps:$4 sm:$0xff]  }
  0x55   :  { %641 = vmatpush1.bf16.msra.mxu0 %v1565_v28 }
  0x56   :  { %642 = vmatprep.subr.bf16.mxu0 %v1570_v29  ;;  %931 = vmatpush1.bf16.msra.mxu1 %v1655_v57  ;;  %v92_v57 = vsub.s32 2, %v1892_v0  ;;  %v1628_v0 = vld [vmem:[#allocation2 + $0x1f0] ss:$8 sps:$4 sm:$0xff]  }
  0x57   :  { %932 = vmatprep.subr.bf16.mxu1 %v1660_v58  ;;  %v1619_v58 = vld [vmem:[#allocation2 + $0x1c0] ss:$8 sps:$4 sm:$0xff]  }
  0x59   :  { %643 = vmatpush1.bf16.msra.mxu0 %v1568_v30  ;;  %v1583_v30 = vld [vmem:[#allocation2 + $0x100] ss:$8 sps:$4 sm:$0xff]  }
  0x5a   :  { %644 = vmatprep.subr.bf16.mxu0 %v1573_v31  ;;  %933 = vmatpush1.bf16.msra.mxu1 %v1658_v59  ;;  %v1624_v59 = vld [vmem:[#allocation2 + $0x1d4] ss:$8 sps:$4 sm:$0xff]  }
  0x5b   :  { %934 = vmatprep.subr.bf16.mxu1 %v1663_v60  ;;  %v93_v60 = vrot.slane %v1900_v5, %v92_v57  ;;  %v1675_v5 = vld [vmem:[#allocation5 + $0xe4] ss:$8 sps:$4 sm:$0xff]  }
  0x5d   :  { %645 = vmatpush1.bf16.msra.mxu0 %v1571_v32  ;;  %v1588_v32 = vld [vmem:[#allocation2 + $0x114] ss:$8 sps:$4 sm:$0xff]  }
  0x5e   :  { %646 = vmatprep.subr.bf16.mxu0 %v1576_v33  ;;  %935 = vmatpush1.bf16.msra.mxu1 %v1661_v62  ;;  %v1627_v62 = vld [vmem:[#allocation2 + $0x1e4] ss:$8 sps:$4 sm:$0xff]  }
  0x5f   :  { %936 = vmatprep.subr.bf16.mxu1 %v1666_v63 }
  0x61   :  { %647 = vmatpush1.bf16.msra.mxu0 %v1574_v34 }
  0x62   :  { %648 = vmatprep.subr.bf16.mxu0 %v1579_v35  ;;  %937 = vmatpush1.bf16.msra.mxu1 %v1664_v1  ;;  %v1586_v35 = vld [vmem:[#allocation2 + $0x110] ss:$8 sps:$4 sm:$0xff]   ;;  %v1625_v1 = vld [vmem:[#allocation2 + $0x1e0] ss:$8 sps:$4 sm:$0xff]  }
  0x63   :  { %938 = vmatprep.subr.bf16.mxu1 %v1669_v2  ;;  %v1630_v2 = vld [vmem:[#allocation2 + $0x1f4] ss:$8 sps:$4 sm:$0xff]  }
  0x65   :  { %649 = vmatpush1.bf16.msra.mxu0 %v1577_v36  ;;  %v1591_v36 = vld [vmem:[#allocation2 + $0x124] ss:$8 sps:$4 sm:$0xff]  }
  0x66   :  { %650 = vmatprep.subr.bf16.mxu0 %v1582_v37  ;;  %939 = vmatpush1.bf16.msra.mxu1 %v1667_v4  ;;  %v1589_v37 = vld [vmem:[#allocation2 + $0x120] ss:$8 sps:$4 sm:$0xff]  }
  0x67   :  { %940 = vmatprep.subr.bf16.mxu1 %v1672_v7 }
  0x69   :  { %651 = vmatpush1.bf16.msra.mxu0 %v1580_v38  ;;  %v1594_v38 = vld [vmem:[#allocation2 + $0x134] ss:$8 sps:$4 sm:$0xff]  }
  0x6a   :  { %661 = vmatprep.subr.bf16.mxu0 %v1585_v39  ;;  %941 = vmatpush1.bf16.msra.mxu1 %v1670_v10  ;;  %v1592_v39 = vld [vmem:[#allocation2 + $0x130] ss:$8 sps:$4 sm:$0xff]   ;;  %v1678_v10 = vld [vmem:[#allocation5 + $0xf4] ss:$8 sps:$4 sm:$0xff]  }
  0x6b   :  { %942 = vmatprep.subr.bf16.mxu1 %v1675_v5  ;;  %v1699_v5 = vld [vmem:[%s2034_s11] sm:$0xff]  }
  0xff   :  { %v160_v12 = vpop.f32.mrb[0].mxu0  ;;  %v1911_v18 = vpop.f32.mrb[0].mxu1 }
 0x100   :  { %v161_v14 = vadd.f32 %v160_v12, %v85_v9  ;;  %v162_v15 = vpop.f32.mrb[1].mxu0  ;;  %v203_v21 = vpop.f32.mrb[1].mxu1  ;;  %v202_v63 = vadd.f32 %v1911_v18, %v93_v60  ;;  %v1673_v9 = vld [vmem:[#allocation5 + $0xe0] ss:$8 sps:$4 sm:$0xff]   ;;  %v1698_v60 = vld [vmem:[%s2032_s9 + $0x18] sm:$0xff]  }
 0x101   :  { %v163_v16 = vadd.f32 %v162_v15, %v89_v11  ;;  %v164_v17 = vpop.f32.mrb[2].mxu0  ;;  %v204_v23 = vadd.f32 %v203_v21, %v97_v13  ;;  %v205_v24 = vpop.f32.mrb[2].mxu1  ;;  %943 = vmatpush1.bf16.msra.mxu1 %v1673_v9  ;;  %v1676_v11 = vld [vmem:[#allocation5 + $0xf0] ss:$8 sps:$4 sm:$0xff]   ;;  %v1679_v12 = vld [vmem:[%s2030_s7 + $0x40] sm:$0xff]  }
 0x102   :  { %vm208_vm1 = vcmp.gt.f32.partialorder %v161_v14, 0.0  ;;  %v212_v19 = vmul.f32 0.2, %v161_v14  ;;  %v165_v20 = vpop.f32.mrb[3].mxu0  ;;  %v206_v26 = vpop.f32.mrb[3].mxu1  ;;  %vm210_vm4 = vcmp.gt.f32.partialorder %v202_v63, 0.0  ;;  %944 = vmatprep.subr.bf16.mxu1 %v1678_v10 }
 0x103   :  { %vm209_vm2 = vcmp.gt.f32.partialorder %v163_v16, 0.0  ;;  %v213_v22 = vmul.f32 0.2, %v163_v16  ;;  %vm211_vm3 = vcmp.gt.f32.partialorder %v204_v23, 0.0  ;;  %v215_v28 = vmul.f32 0.2, %v204_v23 }
 0x104   :  { %v216_v25 = vsel %vm208_vm1, %v161_v14, %v212_v19  ;;  %v214_v4 = vmul.f32 0.2, %v202_v63  ;;  %v288_v13 = vld [vmem:[%s2027_s4] sm:$0x3]  ;;  %v1700_v10 = vld [vmem:[%s2034_s11 + $0x8] sm:$0xff]  }
 0x105   :  { %v217_v27 = vsel %vm209_vm2, %v163_v16, %v213_v22  ;;  %v220_v31 = vpack.c.bf16 %v216_v25, %v216_v25  ;;  %v219_v33 = vsel %vm211_vm3, %v204_v23, %v215_v28  ;;  %945 = vmatpush1.bf16.msra.mxu1 %v1676_v11  ;;  %v293_v14 = vrot.slane %v288_v13, %v1895_v3  ;;  %v1701_v11 = vld [vmem:[%s2034_s11 + $0x10] sm:$0xff]  }
 0x106   :  { %v221_v29 = vpack.c.bf16 %v217_v27, %v217_v27  ;;  %v223_v34 = vpack.c.bf16 %v219_v33, %v219_v33  ;;  %v218_v7 = vsel %vm210_vm4, %v202_v63, %v214_v4  ;;  %1459 = vmatprep.subr.bf16.mxu1 %v1679_v12  ;;  %v297_v15 = vrot.slane %v288_v13, %v1903_v6  ;;  %v1680_v27 = vld [vmem:[%s2030_s7] sm:$0xff]   ;;  %v1685_v33 = vld [vmem:[%s2030_s7 + $0x58] sm:$0xff]  }
 0x107   :  { %v222_v8 = vpack.c.bf16 %v218_v7, %v218_v7  ;;  %v1702_v12 = vld [vmem:[%s2034_s11 + $0x18] sm:$0xff]   ;;  %v1447_v13 = vld [vmem:[%s2033_s10] ss:$0 sm:$0xff]  ;;  %s1782_s11 = smov [#allocation7]  }
 0x108   :  { %652 = vmatprep.mubr.bf16.mxu0 %v221_v29  ;;  %v1681_v29 = vld [vmem:[%s2030_s7 + $0x48] sm:$0xff]   ;;  %s1318_s15 = sshll.u32 %s1782_s11, 4  ;;  %s1319_s15 = int_to_ptr.vmem [resolvable:$true] %s1318_s15 }
 0x109   :  { %653 = vmatmul.mubr.bf16.vlgmr.msra.gmra.mrb[4].mxu0 %v220_v31  ;;  %v1683_v31 = vld [vmem:[%s2030_s7 + $0x50] sm:$0xff]   ;;  %s1747_s10 = scalar_lea.vmem %s1319_s15, 128  ;;  %p1752_p3 = scmp.lt.s32.totalorder %s1319_s15, %s1319_s15 }
 0x10a   :  { %662 = vmatpush1.bf16.msra.mxu0 %v1583_v30  ;;  %693 = vmatprep.mubr.bf16.mxu0 %v223_v34  ;;  %v1682_v30 = vld [vmem:[%s2030_s7 + $0x8] sm:$0xff]   ;;  %v1686_v34 = vld [vmem:[%s2030_s7 + $0x18] sm:$0xff]   ;;  %p1748_p2 = scmp.ne.s32.totalorder %s1319_s15, %s1747_s10  ;;  %p1753_p4 = scmp.lt.s32.totalorder %s1747_s10, %s1747_s10 }
 0x10b   :  { %663 = vmatprep.subr.bf16.mxu0 %v1588_v32  ;;  %v1684_v32 = vld [vmem:[%s2030_s7 + $0x10] sm:$0xff]  }
 0x10c   :  { %p1754_p5 = por %p1753_p4, %p1752_p3 }
 0x10e   :  { %664 = vmatpush1.bf16.msra.mxu0 %v1586_v35  ;;  %v1687_v35 = vld [vmem:[%s2030_s7 + $0x60] sm:$0xff]   ;;  %p1755_p6 = pnand %p1754_p5, %p1748_p2 }
 0x10f   :  { %665 = vmatprep.subr.bf16.mxu0 %v1591_v36  ;;  %v1688_v36 = vld [vmem:[%s2030_s7 + $0x20] sm:$0xff]  }
 0x112   :  { %666 = vmatpush1.bf16.msra.mxu0 %v1589_v37  ;;  %v1689_v37 = vld [vmem:[%s2030_s7 + $0x68] sm:$0xff]  }
 0x113   :  { %667 = vmatprep.subr.bf16.mxu0 %v1594_v38  ;;  %v1690_v38 = vld [vmem:[%s2030_s7 + $0x28] sm:$0xff]  }
 0x116   :  { %668 = vmatpush1.bf16.msra.mxu0 %v1592_v39  ;;  %v1691_v39 = vld [vmem:[%s2030_s7 + $0x70] sm:$0xff]  }
 0x117   :  { %669 = vmatprep.subr.bf16.mxu0 %v1597_v40  ;;  %v1692_v40 = vld [vmem:[%s2030_s7 + $0x30] sm:$0xff]  }
 0x11a   :  { %670 = vmatpush1.bf16.msra.mxu0 %v1595_v41  ;;  %v1693_v41 = vld [vmem:[%s2030_s7 + $0x78] sm:$0xff]  }
 0x11b   :  { %671 = vmatprep.subr.bf16.mxu0 %v1600_v42  ;;  %v1694_v42 = vld [vmem:[%s2030_s7 + $0x38] sm:$0xff]  }
 0x11e   :  { %672 = vmatpush1.bf16.msra.mxu0 %v1598_v43  ;;  %v1780_v43 = vmov 0.0  }
 0x11f   :  { %673 = vmatprep.subr.bf16.mxu0 %v1603_v44  ;;  %v742_v44 = vld [vmem:[%s2029_s6] sm:$0x3] }
 0x122   :  { %674 = vmatpush1.bf16.msra.mxu0 %v1601_v45  ;;  %v747_v45 = vrot.slane %v742_v44, %v1895_v3 }
 0x123   :  { %675 = vmatprep.subr.bf16.mxu0 %v1606_v46  ;;  %v751_v46 = vrot.slane %v742_v44, %v1903_v6  ;;  %v1696_v6 = vld [vmem:[%s2032_s9 + $0x8] sm:$0xff]  }
 0x126   :  { %676 = vmatpush1.bf16.msra.mxu0 %v1604_v47 }
 0x127   :  { %677 = vmatprep.subr.bf16.mxu0 %v1609_v48 }
 0x12a   :  { %678 = vmatpush1.bf16.msra.mxu0 %v1607_v49 }
 0x12b   :  { %679 = vmatprep.subr.bf16.mxu0 %v1612_v50 }
 0x12e   :  { %680 = vmatpush1.bf16.msra.mxu0 %v1610_v51 }
 0x12f   :  { %681 = vmatprep.subr.bf16.mxu0 %v1615_v52 }
 0x132   :  { %682 = vmatpush1.bf16.msra.mxu0 %v1613_v53 }
 0x133   :  { %683 = vmatprep.subr.bf16.mxu0 %v1618_v54 }
 0x136   :  { %684 = vmatpush1.bf16.msra.mxu0 %v1616_v55 }
 0x137   :  { %685 = vmatprep.subr.bf16.mxu0 %v1621_v56 }
 0x13a   :  { %686 = vmatpush1.bf16.msra.mxu0 %v1619_v58  ;;  %v1695_v58 = vld [vmem:[%s2032_s9] sm:$0xff]  }
 0x13b   :  { %687 = vmatprep.subr.bf16.mxu0 %v1624_v59  ;;  %v1697_v59 = vld [vmem:[%s2032_s9 + $0x10] sm:$0xff]  }
 0x13e   :  { %688 = vmatpush1.bf16.msra.mxu0 %v1622_v61 }
 0x13f   :  { %689 = vmatprep.subr.bf16.mxu0 %v1627_v62  ;;  %v1430_v62 = vld [vmem:[%s2031_s8] ss:$0 sm:$0xff] }
 0x142   :  { %690 = vmatpush1.bf16.msra.mxu0 %v1625_v1 }
 0x143   :  { %691 = vmatprep.subr.bf16.mxu0 %v1630_v2 }
 0x146   :  { %692 = vmatpush1.bf16.msra.mxu0 %v1628_v0 }
 0x149   :  { %694 = vmatmul.mubr.bf16.vlgmr.msra.gmra.mrb[4].mxu0 %v222_v8 }
 0x21c   :  { %v695_v16 = vpop.f32.mrb[4].mxu0 }
 0x21d   :  { %v1515_v17 = vadd.f32 %v695_v16, %v293_v14  ;;  %v697_v18 = vpop.f32.mrb[5].mxu0 }
 0x21e   :  { %v1516_v19 = vadd.f32 %v697_v18, %v297_v15  ;;  %v699_v20 = vpop.f32.mrb[6].mxu0 }
 0x21f   :  { %vm702_vm5 = vcmp.gt.f32.partialorder %v1515_v17, 0.0  ;;  %v704_v21 = vmul.f32 0.2, %v1515_v17  ;;  %v700_v22 = vpop.f32.mrb[7].mxu0 }
 0x220   :  { %vm703_vm6 = vcmp.gt.f32.partialorder %v1516_v19, 0.0  ;;  %v705_v23 = vmul.f32 0.2, %v1516_v19  ;;  %v1453_v22 = vld [vmem:[%s2035_s12] ss:$0 sm:$0xff] }
 0x221   :  { %v706_v24 = vsel %vm702_vm5, %v1515_v17, %v704_v21 }
 0x222   :  { %v707_v25 = vsel %vm703_vm6, %v1516_v19, %v705_v23  ;;  %v708_v28 = vpack.c.bf16 %v706_v24, %v706_v24 }
 0x223   :  { %v709_v26 = vpack.c.bf16 %v707_v25, %v707_v25 }
 0x225   :  { %946 = vmatprep.mubr.bf16.mxu1 %v709_v26 }
 0x226   :  { %947 = vmatmul.mubr.bf16.vlgmr.msra.gmra.mrb[4].mxu1 %v708_v28 }
 0x227   :  { %1460 = vmatpush3.bf16.msra.mxu1 %v1680_v27 }
 0x228   :  { %1461 = vmatprep.subr.bf16.mxu1 %v1681_v29 }
 0x22b   :  { %1462 = vmatpush3.bf16.msra.mxu1 %v1682_v30 }
 0x22c   :  { %1463 = vmatprep.subr.bf16.mxu1 %v1683_v31 }
 0x22f   :  { %1464 = vmatpush3.bf16.msra.mxu1 %v1684_v32 }
 0x230   :  { %1465 = vmatprep.subr.bf16.mxu1 %v1685_v33 }
 0x233   :  { %1466 = vmatpush3.bf16.msra.mxu1 %v1686_v34 }
 0x234   :  { %1467 = vmatprep.subr.bf16.mxu1 %v1687_v35 }
 0x237   :  { %1468 = vmatpush3.bf16.msra.mxu1 %v1688_v36 }
 0x238   :  { %1469 = vmatprep.subr.bf16.mxu1 %v1689_v37 }
 0x23b   :  { %1470 = vmatpush3.bf16.msra.mxu1 %v1690_v38 }
 0x23c   :  { %1471 = vmatprep.subr.bf16.mxu1 %v1691_v39 }
 0x23f   :  { %1472 = vmatpush3.bf16.msra.mxu1 %v1692_v40 }
 0x240   :  { %1473 = vmatprep.subr.bf16.mxu1 %v1693_v41 }
 0x243   :  { %1474 = vmatpush3.bf16.msra.mxu1 %v1694_v42 }
 0x244   :  { %1491 = vmatprep.subr.bf16.mxu1 %v1780_v43 }
 0x2f9   :  { %v948_v47 = vpop.f32.mrb[4].mxu1 }
 0x2fa   :  { %v949_v48 = vadd.f32 %v948_v47, %v747_v45  ;;  %v950_v49 = vpop.f32.mrb[5].mxu1 }
 0x2fb   :  { %v951_v50 = vadd.f32 %v950_v49, %v751_v46  ;;  %v952_v51 = vpop.f32.mrb[6].mxu1 }
 0x2fc   :  { %vm955_vm7 = vcmp.gt.f32.partialorder %v949_v48, 0.0  ;;  %v957_v52 = vmul.f32 0.2, %v949_v48  ;;  %v953_v53 = vpop.f32.mrb[7].mxu1 }
 0x2fd   :  { %vm956_vm8 = vcmp.gt.f32.partialorder %v951_v50, 0.0  ;;  %v958_v54 = vmul.f32 0.2, %v951_v50 }
 0x2fe   :  { %v959_v55 = vsel %vm955_vm7, %v949_v48, %v957_v52 }
 0x2ff   :  { %v960_v56 = vsel %vm956_vm8, %v951_v50, %v958_v54  ;;  %v961_v3 = vpack.c.bf16 %v959_v55, %v959_v55 }
 0x300   :  { %v962_v57 = vpack.c.bf16 %v960_v56, %v960_v56 }
 0x302   :  { %1130 = vmatprep.mubr.bf16.mxu1 %v962_v57 }
 0x303   :  { %1131 = vmatmul.mubr.bf16.vlgmr.msra.gmra.mrb[8].mxu1 %v961_v3 }
 0x304   :  { %1492 = vmatpush3.bf16.msra.mxu1 %v1695_v58  ;;  %1499 = vmatprep.mubr.msk.bf16.mxu1 %vm1781_vm9, %v1780_v43 }
 0x305   :  { %1493 = vmatprep.subr.bf16.mxu1 %v1780_v43 }
 0x308   :  { %1494 = vmatpush3.bf16.msra.mxu1 %v1696_v6 }
 0x309   :  { %1495 = vmatprep.subr.bf16.mxu1 %v1780_v43 }
 0x30c   :  { %1496 = vmatpush3.bf16.msra.mxu1 %v1697_v59 }
 0x30d   :  { %1497 = vmatprep.subr.bf16.mxu1 %v1780_v43 }
 0x310   :  { %1498 = vmatpush3.bf16.msra.mxu1 %v1698_v60 }
 0x311   :  { %1503 = vmatprep.subr.bf16.mxu1 %v1780_v43 }
 0x3d6   :  { %v1475_v61 = vpop.f32.mrb[8].mxu1 }
 0x3d7   :  { %v1476_v63 = vpop.f32.mrb[9].mxu1 }
 0x3d8   :  { %v1477_v1 = vadd.f32 %v1476_v63, %v1475_v61  ;;  %v1478_v2 = vpop.f32.mrb[10].mxu1 }
 0x3d9   :  { %v1479_v4 = vpop.f32.mrb[11].mxu1 }
 0x3da   :  { %v1133_v0 = vadd.f32 %v1477_v1, %v1430_v62 }
 0x3dc   :  { %vm1138_vm10 = vcmp.gt.f32.partialorder %v1133_v0, 0.0  ;;  %v1139_v7 = vmul.f32 0.2, %v1133_v0 }
 0x3de   :  { %v1140_v8 = vsel %vm1138_vm10, %v1133_v0, %v1139_v7 }
 0x3df   :  { %v1141_v9 = vpack.c.bf16 %v1140_v8, %v1140_v8 }
 0x3e1   :  { %1500 = vmatmul.mubr.msk.bf16.vlgmr.msra.gmra.mrb[12].mxu1 %vm1181_vm11, %v1141_v9 }
 0x3e2   :  { %1504 = vmatpush3.bf16.msra.mxu1 %v1699_v5  ;;  %1511 = vmatprep.mubr.msk.bf16.mxu1 %vm1781_vm9, %v1780_v43 }
 0x3e3   :  { %1505 = vmatprep.subr.bf16.mxu1 %v1780_v43 }
 0x3e6   :  { %1506 = vmatpush3.bf16.msra.mxu1 %v1700_v10 }
 0x3e7   :  { %1507 = vmatprep.subr.bf16.mxu1 %v1780_v43 }
 0x3ea   :  { %1508 = vmatpush3.bf16.msra.mxu1 %v1701_v11 }
 0x3eb   :  { %1509 = vmatprep.subr.bf16.mxu1 %v1780_v43 }
 0x3ee   :  { %1510 = vmatpush3.bf16.msra.mxu1 %v1702_v12 }
 0x4b4   :  { %v1219_v14 = vpop.f32.mrb[12].mxu1 }
 0x4b5   :  { %v1220_v15 = vadd.f32 %v1447_v13, %v1219_v14  ;;  %v1501_v16 = vpop.f32.mrb[13].mxu1 }
 0x4b6   :  { %v1222_v17 = vpop.f32.mrb[14].mxu1 }
 0x4b7   :  { %vm1225_vm12 = vcmp.gt.f32.partialorder %v1220_v15, 0.0  ;;  %v1226_v18 = vmul.f32 0.2, %v1220_v15  ;;  %v1502_v19 = vpop.f32.mrb[15].mxu1 }
 0x4b9   :  { %v1227_v20 = vsel %vm1225_vm12, %v1220_v15, %v1226_v18 }
 0x4ba   :  { %v1228_v21 = vpack.c.bf16 %v1227_v20, %v1227_v20 }
 0x4bc   :  { %1512 = vmatmul.mubr.msk.bf16.vlgmr.msra.gmra.mrb[16].mxu1 %vm1181_vm11, %v1228_v21 }
 0x58f   :  { %v1305_v23 = vpop.f32.mrb[16].mxu1 }
 0x590   :  { %v1306_v24 = vadd.f32 %v1453_v22, %v1305_v23  ;;  %v1513_v25 = vpop.f32.mrb[17].mxu1 }
 0x591   :  { %v1308_v26 = vpop.f32.mrb[18].mxu1 }
 0x592   :  { %1311 = vst [vmem:[#allocation7] sm:$0xff] %v1306_v24  ;;  %v1514_v27 = vpop.f32.mrb[19].mxu1 }
 0x593   :  { %1758 = shalt.err (!%p1755_p6)
}
 0x594   :  { %s1759_s12 = scalar_lea.hbm %s2036_s13, 128 }
 0x595   :  { %p1760_p7 = scmp.ne.s32.totalorder %s2036_s13, %s1759_s12  ;;  %p1763_p8 = scmp.lt.u32.totalorder %s1759_s12, %s2036_s13 }
 0x597   :  { %p1765_p9 = pnand %p1763_p8, %p1760_p7 }
 0x599   :  { %1768 = shalt.err (!%p1765_p9)
}
 0x59a   :  { %1321 = dma.vmem_to_hbm [thread:$0]  %s1319_s15, 128, %s2036_s13, [#allocation4]  }
 0x59b   :  { %1773 = dma.done.wait [#allocation4], 128  }
 0x59c   :  { %1774 = vsyncadd [#allocation4], 4294967168 }
 0x59d   :  { %1325 = vsyncpa [#allocation3], 1 }
 0x59e   :  { %1326 = vsyncpa [#allocation6], 1 }
 0x59f   :  { %1327 = vsyncpa [#allocation4], 1 }

</bundles_post_ra>
